<compile_context>
chip_gen: v7x
topology: tpu7x:2x2x1
jax: 0.10.0
libtpu: 0.0.40
codegen_flags: <defaults>
</compile_context>

<pallas_src>
import functools
import math

import jax
import jax.numpy as jnp
from jax.experimental import pallas as pl
from jax.experimental.pallas import tpu as pltpu


# --------------------------------------------------------------------------- #
# Kernel A: whole (padded) sequence fits in one query tile (n_q == 1).
# One fused (S,H) x (H,3H) QKV matmul, no K/V scratch, grid = (B,).
# --------------------------------------------------------------------------- #
def _attn_single_kernel(x_ref, w_ref, b_ref, o_ref, *,
                        num_heads, head_size, hidden, seq_kv, kv_valid):
    nh, d, H = num_heads, head_size, hidden
    scale = 1.0 / math.sqrt(d)

    x = x_ref[0].astype(jnp.bfloat16)                                  # (S, H)
    qkv = jnp.dot(x, w_ref[...], preferred_element_type=jnp.float32)
    qkv = qkv + b_ref[...]                                             # (S, 3H) f32

    # Cast to bf16 BEFORE the head-major relayout (halves relayout traffic).
    q = (qkv[:, :H] * scale).astype(jnp.bfloat16)                      # scale folded
    k = qkv[:, H:2 * H].astype(jnp.bfloat16)
    v = qkv[:, 2 * H:].astype(jnp.bfloat16)

    # Head split: one reshape + transpose per tensor (no per-head Python loop).
    qh = q.reshape(seq_kv, nh, d).transpose(1, 0, 2)                   # (nh, S, d)
    kh = k.reshape(seq_kv, nh, d).transpose(1, 0, 2)                   # (nh, S, d)
    kT = jnp.swapaxes(kh, 1, 2)                                        # (nh, d, S) lane-dense
    vh = v.reshape(seq_kv, nh, d).transpose(1, 0, 2)                   # (nh, S, d)

    s = jnp.einsum('nqd,ndk->nqk', qh, kT,
                   preferred_element_type=jnp.float32)                 # (nh, S, S)
    if kv_valid < seq_kv:   # static: mask padded key positions (computed once)
        key_idx = jax.lax.broadcasted_iota(jnp.int32, s.shape, 2)
        s = jnp.where(key_idx < kv_valid, s, -1e30)

    # Softmax kept in f32 (v5e-safe).
    s = s - jnp.max(s, axis=-1, keepdims=True)
    e = jnp.exp(s)
    p = e * pl.reciprocal(jnp.sum(e, axis=-1, keepdims=True), approx=True)
    # TODO(synk): attention-probs dropout omitted (eval-mode identity);
    # head_mask=None / output_attentions=False paths only.

    ctx = jnp.einsum('nqk,nkd->nqd', p.astype(jnp.bfloat16), vh,
                     preferred_element_type=jnp.float32)               # (nh, S, d)
    out = ctx.transpose(1, 0, 2).reshape(seq_kv, H)                    # single merge
    o_ref[0] = out.astype(o_ref.dtype)                                 # lane-dense store


# --------------------------------------------------------------------------- #
# Kernel B: tiled query axis (n_q > 1).  K/V projected once per batch element
# at q-tile 0 and cached head-major in bf16 VMEM scratch (K transposed).
# Grid = (B, n_q).
# --------------------------------------------------------------------------- #
def _attn_tiled_kernel(xq_ref, xkv_ref, w_ref, b_ref, o_ref, k_scr, v_scr, *,
                       num_heads, head_size, hidden, seq_kv, kv_valid, q_tile):
    nh, d, H = num_heads, head_size, hidden
    scale = 1.0 / math.sqrt(d)

    # ---- K/V projection for the full (padded) sequence: once per batch elem ----
    @pl.when(pl.program_id(1) == 0)
    def _():
        xk = xkv_ref[0].astype(jnp.bfloat16)                           # (S_kv, H)
        kv = jnp.dot(xk, w_ref[:, H:], preferred_element_type=jnp.float32)
        kv = (kv + b_ref[:, H:]).astype(jnp.bfloat16)                  # bf16 before relayout
        k3 = kv[:, :H].reshape(seq_kv, nh, d).transpose(1, 0, 2)       # (nh, S_kv, d)
        k_scr[...] = jnp.swapaxes(k3, 1, 2)                            # (nh, d, S_kv)
        v_scr[...] = kv[:, H:].reshape(seq_kv, nh, d).transpose(1, 0, 2)

    # ---- Q projection for this query tile (scale folded into Q) ----
    xq = xq_ref[0].astype(jnp.bfloat16)                                # (tq, H)
    q = jnp.dot(xq, w_ref[:, :H], preferred_element_type=jnp.float32)
    q = ((q + b_ref[:, :H]) * scale).astype(jnp.bfloat16)              # (tq, H)
    qh = q.reshape(q_tile, nh, d).transpose(1, 0, 2)                   # (nh, tq, d)

    # Lane-dense transposed-K scratch feeds the MXU RHS directly.
    s = jnp.einsum('nqd,ndk->nqk', qh, k_scr[...],
                   preferred_element_type=jnp.float32)                 # (nh, tq, S_kv)
    if kv_valid < seq_kv:   # static: mask padded key positions
        key_idx = jax.lax.broadcasted_iota(jnp.int32, s.shape, 2)
        s = jnp.where(key_idx < kv_valid, s, -1e30)

    s = s - jnp.max(s, axis=-1, keepdims=True)
    e = jnp.exp(s)
    p = e * pl.reciprocal(jnp.sum(e, axis=-1, keepdims=True), approx=True)
    # TODO(synk): attention-probs dropout omitted (eval-mode identity).

    ctx = jnp.einsum('nqk,nkd->nqd', p.astype(jnp.bfloat16), v_scr[...],
                     preferred_element_type=jnp.float32)               # (nh, tq, d)
    out = ctx.transpose(1, 0, 2).reshape(q_tile, H)
    o_ref[0] = out.astype(o_ref.dtype)                                 # lane-dense store


def _clamp_vmem(est_bytes):
    # 2x margin for compiler-internal scratch; floor 16 MiB, ceiling 48 MiB
    # (safe even on v7x's 64 MiB physical per-TensorCore VMEM).
    return int(min(max(2 * est_bytes, 16 * 1024 * 1024), 48 * 1024 * 1024))


def vit_self_attention(hidden_states, wq, wk, wv, bq, bk, bv, *,
                       num_heads, q_tile=None):
    """hidden_states: (B, S, H); wq/wk/wv: (H, H) already transposed; b*: (H,)."""
    B, S, H = hidden_states.shape
    assert H % num_heads == 0
    d = H // num_heads

    # Pad the sequence to a multiple of 8 and of the query tile.
    s8 = ((S + 7) // 8) * 8
    if q_tile is None:
        # Keep f32 score intermediates (~3 * nh * tq * s_pad * 4 B) modest for
        # v7x's smaller VMEM; 256 matches the v6e MXU M-dim when it fits.
        q_tile = 256 if num_heads * s8 <= 8192 else 128
    tq = min(((q_tile + 7) // 8) * 8, s8)
    s_pad = ((s8 + tq - 1) // tq) * tq
    n_q = s_pad // tq

    x = hidden_states
    if s_pad != S:
        x = jnp.pad(x, ((0, 0), (0, s_pad - S), (0, 0)))

    # Fused QKV parameters (weights bf16 for the MXU; bias stays f32).
    w_qkv = jnp.concatenate([wq, wk, wv], axis=1).astype(jnp.bfloat16)   # (H, 3H)
    b_qkv = jnp.concatenate([bq, bk, bv]).reshape(1, 3 * H).astype(jnp.float32)

    if n_q == 1:
        # ---------------- single-tile path (standard ViT: S <= q_tile) -------
        kernel = functools.partial(
            _attn_single_kernel, num_heads=num_heads, head_size=d, hidden=H,
            seq_kv=s_pad, kv_valid=S)
        est = (4 * s_pad * H * 4                       # x + out, double-buffered
               + H * 3 * H * 2 + 3 * H * 4             # weights + bias (1x buffered)
               + s_pad * 3 * H * 4                     # qkv f32
               + 6 * s_pad * H * 2                     # q/k/v bf16 + head-major copies
               + 4 * num_heads * s_pad * s_pad * 4     # scores/exp/probs f32
               + 2 * s_pad * H * 4)                    # ctx f32 + out staging
        out = pl.pallas_call(
            kernel,
            out_shape=jax.ShapeDtypeStruct((B, s_pad, H), hidden_states.dtype),
            grid_spec=pltpu.PrefetchScalarGridSpec(
                num_scalar_prefetch=0,
                grid=(B,),
                in_specs=[
                    pl.BlockSpec((1, s_pad, H), lambda b: (b, 0, 0)),     # x
                    pl.BlockSpec((H, 3 * H), lambda b: (0, 0),
                                 pipeline_mode=pl.Buffered(1)),           # W_qkv
                    pl.BlockSpec((1, 3 * H), lambda b: (0, 0),
                                 pipeline_mode=pl.Buffered(1)),           # b_qkv
                ],
                out_specs=pl.BlockSpec((1, s_pad, H), lambda b: (b, 0, 0))),
            compiler_params=pltpu.CompilerParams(
                dimension_semantics=("parallel",),
                vmem_limit_bytes=_clamp_vmem(est)),
        )(x, w_qkv, b_qkv)
    else:
        # ---------------- tiled-query path with K/V VMEM cache ---------------
        kernel = functools.partial(
            _attn_tiled_kernel, num_heads=num_heads, head_size=d, hidden=H,
            seq_kv=s_pad, kv_valid=S, q_tile=tq)
        est = (2 * tq * H * 4 + 2 * s_pad * H * 4      # xq + xkv, double-buffered
               + H * 3 * H * 2 + 3 * H * 4             # weights + bias (1x buffered)
               + 2 * tq * H * 4                        # out, double-buffered
               + 2 * num_heads * s_pad * d * 2         # K/V bf16 scratch
               + s_pad * 2 * H * 4 + s_pad * 2 * H * 2 # kv projection f32 + bf16
               + 4 * num_heads * tq * s_pad * 4        # scores/exp/probs f32
               + 2 * tq * H * 4)                       # q f32 + ctx f32
        out = pl.pallas_call(
            kernel,
            out_shape=jax.ShapeDtypeStruct((B, s_pad, H), hidden_states.dtype),
            grid_spec=pltpu.PrefetchScalarGridSpec(
                num_scalar_prefetch=0,
                grid=(B, n_q),
                in_specs=[
                    pl.BlockSpec((1, tq, H), lambda b, qi: (b, qi, 0)),     # x (Q tile)
                    pl.BlockSpec((1, s_pad, H), lambda b, qi: (b, 0, 0)),   # x (K/V, full S)
                    pl.BlockSpec((H, 3 * H), lambda b, qi: (0, 0),
                                 pipeline_mode=pl.Buffered(1)),             # W_qkv
                    pl.BlockSpec((1, 3 * H), lambda b, qi: (0, 0),
                                 pipeline_mode=pl.Buffered(1)),             # b_qkv
                ],
                out_specs=pl.BlockSpec((1, tq, H), lambda b, qi: (b, qi, 0)),
                scratch_shapes=[
                    pltpu.VMEM((num_heads, d, s_pad), jnp.bfloat16),        # K^T cache
                    pltpu.VMEM((num_heads, s_pad, d), jnp.bfloat16),        # V cache
                ]),
            compiler_params=pltpu.CompilerParams(
                # Batch axis megacore-parallel; q-tile axis 'arbitrary' because
                # the K/V scratch is filled at q-tile 0 and reused afterwards.
                dimension_semantics=("parallel", "arbitrary"),
                vmem_limit_bytes=_clamp_vmem(est)),
        )(x, x, w_qkv, b_qkv)

    return out[:, :S, :] if s_pad != S else out


def _reference(x, wq, wk, wv, bq, bk, bv, num_heads):
    """Pure-JAX reference matching the PyTorch forward (eval mode)."""
    B, S, H = x.shape
    d = H // num_heads
    scale = 1.0 / math.sqrt(d)

    def split_heads(t):  # (B, S, H) -> (B, nh, S, d)
        return t.reshape(B, S, num_heads, d).transpose(0, 2, 1, 3)

    q = split_heads(x @ wq + bq)
    k = split_heads(x @ wk + bk)
    v = split_heads(x @ wv + bv)
    scores = jnp.einsum("bhqd,bhkd->bhqk", q, k) * scale
    probs = jax.nn.softmax(scores, axis=-1)
    ctx = jnp.einsum("bhqk,bhkd->bhqd", probs, v)
    return ctx.transpose(0, 2, 1, 3).reshape(B, S, H)


if __name__ == "__main__":
    # Config: hidden_size=32, num_attention_heads=4, qkv_bias=True
    B, S, H = 2, 8, 32
    num_heads = 4

    key = jax.random.PRNGKey(0)
    kx, kwq, kwk, kwv, kbq, kbk, kbv, kx2 = jax.random.split(key, 8)

    x = jax.random.normal(kx, (B, S, H), dtype=jnp.float32)
    bound = 1.0 / math.sqrt(H)
    wq = jax.random.uniform(kwq, (H, H), jnp.float32, -bound, bound)
    wk = jax.random.uniform(kwk, (H, H), jnp.float32, -bound, bound)
    wv = jax.random.uniform(kwv, (H, H), jnp.float32, -bound, bound)
    bq = jax.random.uniform(kbq, (H,), jnp.float32, -bound, bound)
    bk = jax.random.uniform(kbk, (H,), jnp.float32, -bound, bound)
    bv = jax.random.uniform(kbv, (H,), jnp.float32, -bound, bound)

    # 1) Standard ViT case: whole sequence in one query tile (single-tile kernel).
    out = vit_self_attention(x, wq, wk, wv, bq, bk, bv, num_heads=num_heads)
    out = jax.block_until_ready(out)
    ref = _reference(x, wq, wk, wv, bq, bk, bv, num_heads)
    assert out.shape == (B, S, H)
    # bf16 MXU operands + approx reciprocal -> compare with relaxed tolerance.
    assert jnp.allclose(out, ref, atol=3e-2, rtol=3e-2), "mismatch vs reference (single-tile)"

    # 2) Tiled-query path with sequence padding + key masking (q_tile=8, S=13).
    S2 = 13
    x2 = jax.random.normal(kx2, (B, S2, H), dtype=jnp.float32)
    out2 = vit_self_attention(x2, wq, wk, wv, bq, bk, bv,
                              num_heads=num_heads, q_tile=8)
    out2 = jax.block_until_ready(out2)
    ref2 = _reference(x2, wq, wk, wv, bq, bk, bv, num_heads)
    assert out2.shape == (B, S2, H)
    assert jnp.allclose(out2, ref2, atol=3e-2, rtol=3e-2), "mismatch vs reference (tiled)"

    print("KERNEL_OK")
</pallas_src>

<mosaic_0001>
module attributes {stable_mosaic.version = 11 : i64} {
  func.func @_attn_single_kernel(%arg0: i32, %arg1: memref<1x8x32xf32, #tpu.memory_space<vmem>>, %arg2: memref<32x96xbf16, #tpu.memory_space<vmem>>, %arg3: memref<1x96xf32, #tpu.memory_space<vmem>>, %arg4: memref<1x8x32xf32, #tpu.memory_space<vmem>>) attributes {dimension_semantics = [#tpu.dimension_semantics<parallel>], iteration_bounds = array<i64: 2>, scalar_prefetch = 0 : i64, scratch_operands = 0 : i64, tpu.core_type = #tpu.core_type<tc>, window_params = [{transform_indices = @transform_0, window_bounds = array<i64: 1, 8, 32>}, {pipeline_mode = #tpu.pipeline_mode<synchronous>, transform_indices = @transform_1, window_bounds = array<i64: 32, 96>}, {pipeline_mode = #tpu.pipeline_mode<synchronous>, transform_indices = @transform_2, window_bounds = array<i64: 1, 96>}, {transform_indices = @transform_3, window_bounds = array<i64: 1, 8, 32>}]} {
    %c0 = arith.constant 0 : index
    %c0_0 = arith.constant 0 : index
    %c0_1 = arith.constant 0 : index
    %0 = vector.load %arg1[%c0, %c0_0, %c0_1] : memref<1x8x32xf32, #tpu.memory_space<vmem>>, vector<1x8x32xf32>
    %1 = vector.shape_cast %0 : vector<1x8x32xf32> to vector<8x32xf32>
    %2 = arith.truncf %1 : vector<8x32xf32> to vector<8x32xbf16>
    %c0_2 = arith.constant 0 : index
    %c0_3 = arith.constant 0 : index
    %3 = vector.load %arg2[%c0_2, %c0_3] : memref<32x96xbf16, #tpu.memory_space<vmem>>, vector<32x96xbf16>
    %cst = arith.constant dense<0.000000e+00> : vector<8x96xf32>
    %4 = tpu.matmul %2, %3, %cst {dimension_numbers = #tpu.dot_dimension_numbers<[1], [0], [0], [1], [0, 0, 1, 1], [], []>} : vector<8x32xbf16>, vector<32x96xbf16>, vector<8x96xf32> -> vector<8x96xf32>
    %c0_4 = arith.constant 0 : index
    %c0_5 = arith.constant 0 : index
    %5 = vector.load %arg3[%c0_4, %c0_5] : memref<1x96xf32, #tpu.memory_space<vmem>>, vector<1x96xf32>
    %6 = vector.broadcast %5 : vector<1x96xf32> to vector<8x96xf32>
    %7 = arith.addf %4, %6 : vector<8x96xf32>
    %8 = vector.extract_strided_slice %7 {offsets = [0, 0], sizes = [8, 32], strides = [1, 1]} : vector<8x96xf32> to vector<8x32xf32>
    %cst_6 = arith.constant 0.353553385 : f32
    %9 = vector.broadcast %cst_6 : f32 to vector<8x32xf32>
    %10 = arith.mulf %8, %9 : vector<8x32xf32>
    %11 = arith.truncf %10 : vector<8x32xf32> to vector<8x32xbf16>
    %12 = vector.extract_strided_slice %7 {offsets = [0, 32], sizes = [8, 32], strides = [1, 1]} : vector<8x96xf32> to vector<8x32xf32>
    %13 = arith.truncf %12 : vector<8x32xf32> to vector<8x32xbf16>
    %14 = vector.extract_strided_slice %7 {offsets = [0, 64], sizes = [8, 32], strides = [1, 1]} : vector<8x96xf32> to vector<8x32xf32>
    %15 = arith.truncf %14 : vector<8x32xf32> to vector<8x32xbf16>
    %16 = vector.shape_cast %11 : vector<8x32xbf16> to vector<8x4x8xbf16>
    %17 = tpu.transpose %16, [1, 0, 2] : vector<8x4x8xbf16> -> vector<4x8x8xbf16>
    %18 = vector.shape_cast %13 : vector<8x32xbf16> to vector<8x4x8xbf16>
    %19 = tpu.transpose %18, [1, 0, 2] : vector<8x4x8xbf16> -> vector<4x8x8xbf16>
    %20 = tpu.transpose %19, [0, 2, 1] : vector<4x8x8xbf16> -> vector<4x8x8xbf16>
    %21 = vector.shape_cast %15 : vector<8x32xbf16> to vector<8x4x8xbf16>
    %22 = tpu.transpose %21, [1, 0, 2] : vector<8x4x8xbf16> -> vector<4x8x8xbf16>
    "tpu.trace_start"() <{level = 10 : i32, message = "nqd,ndk->nqk"}> : () -> ()
    %cst_7 = arith.constant dense<0.000000e+00> : vector<4x8x8xf32>
    %23 = tpu.matmul %17, %20, %cst_7 {dimension_numbers = #tpu.dot_dimension_numbers<[2], [1], [1], [2], [0, 0, 0, 1, 1, 2], [0], [0]>} : vector<4x8x8xbf16>, vector<4x8x8xbf16>, vector<4x8x8xf32> -> vector<4x8x8xf32>
    "tpu.trace_stop"() : () -> ()
    %cst_8 = arith.constant dense<0xFF800000> : vector<4x8xf32>
    %24 = vector.multi_reduction <maximumf>, %23, %cst_8 [2] : vector<4x8x8xf32> to vector<4x8xf32>
    %25 = vector.shape_cast %24 : vector<4x8xf32> to vector<4x8x1xf32>
    %26 = vector.broadcast %25 : vector<4x8x1xf32> to vector<4x8x8xf32>
    %27 = arith.subf %23, %26 : vector<4x8x8xf32>
    %28 = math.exp %27 : vector<4x8x8xf32>
    %cst_9 = arith.constant dense<0.000000e+00> : vector<4x8xf32>
    %29 = vector.multi_reduction <add>, %28, %cst_9 [2] : vector<4x8x8xf32> to vector<4x8xf32>
    %30 = vector.shape_cast %29 : vector<4x8xf32> to vector<4x8x1xf32>
    %31 = tpu.reciprocal %30 {approx = true} : vector<4x8x1xf32> -> vector<4x8x1xf32>
    %32 = vector.broadcast %31 : vector<4x8x1xf32> to vector<4x8x8xf32>
    %33 = arith.mulf %28, %32 : vector<4x8x8xf32>
    %34 = arith.truncf %33 : vector<4x8x8xf32> to vector<4x8x8xbf16>
    "tpu.trace_start"() <{level = 10 : i32, message = "nqk,nkd->nqd"}> : () -> ()
    %cst_10 = arith.constant dense<0.000000e+00> : vector<4x8x8xf32>
    %35 = tpu.matmul %34, %22, %cst_10 {dimension_numbers = #tpu.dot_dimension_numbers<[2], [1], [1], [2], [0, 0, 0, 1, 1, 2], [0], [0]>} : vector<4x8x8xbf16>, vector<4x8x8xbf16>, vector<4x8x8xf32> -> vector<4x8x8xf32>
    "tpu.trace_stop"() : () -> ()
    %36 = tpu.transpose %35, [1, 0, 2] : vector<4x8x8xf32> -> vector<8x4x8xf32>
    %37 = vector.shape_cast %36 : vector<8x4x8xf32> to vector<8x32xf32>
    %c0_11 = arith.constant 0 : index
    %c0_12 = arith.constant 0 : index
    %c0_13 = arith.constant 0 : index
    %38 = vector.load %arg4[%c0_11, %c0_12, %c0_13] : memref<1x8x32xf32, #tpu.memory_space<vmem>>, vector<1x8x32xf32>
    %39 = vector.shape_cast %38 : vector<1x8x32xf32> to vector<8x32xf32>
    %40 = vector.shape_cast %37 : vector<8x32xf32> to vector<1x8x32xf32>
    tpu.vector_store %arg4[%c0_11, %c0_12, %c0_13], %40 {strides = array<i32>} : memref<1x8x32xf32, #tpu.memory_space<vmem>>, vector<1x8x32xf32>,
    return
  }
  func.func @transform_0(%arg0: i32) -> (i32, i32, i32) {
    %c0_i32 = arith.constant 0 : i32
    %c0_i32_0 = arith.constant 0 : i32
    %c0_i32_1 = arith.constant 0 : i32
    return %arg0, %c0_i32, %c0_i32_0 : i32, i32, i32
  }
  func.func @transform_1(%arg0: i32) -> (i32, i32) {
    %c0_i32 = arith.constant 0 : i32
    %c0_i32_0 = arith.constant 0 : i32
    %c0_i32_1 = arith.constant 0 : i32
    return %c0_i32, %c0_i32_0 : i32, i32
  }
  func.func @transform_2(%arg0: i32) -> (i32, i32) {
    %c0_i32 = arith.constant 0 : i32
    %c0_i32_0 = arith.constant 0 : i32
    %c0_i32_1 = arith.constant 0 : i32
    return %c0_i32, %c0_i32_0 : i32, i32
  }
  func.func @transform_3(%arg0: i32) -> (i32, i32, i32) {
    %c0_i32 = arith.constant 0 : i32
    %c0_i32_0 = arith.constant 0 : i32
    %c0_i32_1 = arith.constant 0 : i32
    return %arg0, %c0_i32, %c0_i32_0 : i32, i32, i32
  }
}

</mosaic_0001>

<bundles_post_ra>
// kernel: tpu_custom_call.1
= control target key start
LH: loop header
LB: loop body
LE: loop exit
PB: predicated region body
PF: predicated region fallthrough
CT: control target
= control target key end

     0   :  { %8 = vsyncpa [#allocation3], 0  ;;  %s2189_s0 = inlined_call_operand.hbm [shape: f32[2,8,32], index: 0, kind: input, shape index: {}]   ;;  %s2190_s1 = inlined_call_operand.hbm [shape: bf16[32,96], index: 1, kind: input, shape index: {}]   ;;  %s2191_s2 = inlined_call_operand.vmem [shape: f32[1,96], index: 2, kind: input, shape index: {}]   ;;  %s2192_s3 = inlined_call_operand.hbm [shape: f32[2,8,32], index: 3, kind: output, shape index: {}]  }
   0x1   :  { %10 = vsyncpa [#allocation3 + $0x1], 0 }
   0x2   :  { %11 = vsyncpa [#allocation6], 0 }
   0x3   :  { %12 = vsyncpa [#allocation4], 0 }
   0x4   :  { %14 = vsyncpa [#allocation4 + $0x1], 0  ;;  %s1816_s12 = smov 0   ;;  %s1818_s13 = smov 0  }
   0x5   :  { %s1820_s14 = smov 0   ;;  %s1822_s15 = smov 0  }
   0x6 LB: > { %s1837_s16 = sadd.s32 4294967295, %s1776_s15   ;;  %s1455_s17 = sadd.s32 4294967294, %s1776_s15   ;;  %s1776_s15 = sphi %s1822_s15, %s2212_s15   ;;  %s1772_s14 = sphi %s1820_s14, %s2211_s14   ;;  %s1768_s13 = sphi %s1818_s13, %s2210_s13   ;;  %s1764_s12 = sphi %s1816_s12, %s2209_s12  }
   0x7   : > { %p40_p0 = scmp.ne.s32.totalorder %s1768_s13, %s1764_s12  ;;  %p2193_p1 = scmp.eq.s32.totalorder %s1837_s16, 0 }
   0x8   : > { %p112_p3 = scmp.eq.s32.totalorder %s1455_s17, 1  ;;  %p1456_p5 = scmp.ge.s32.totalorder %s1776_s15, 1 }
   0x9   : > { %p1846_p4 = por %p2193_p1, %p40_p0  ;;  %p119_p7 = scmp.lt.s32.totalorder %s1776_s15, 3 }
   0xa   : > { %p1851_p6 = por %p112_p3, %p40_p0  ;;  %s1778_s21 = smov [#allocation5]  }
   0xb   : > { %s2196_s18 = scalar_select %p1846_p4, 1, 0 }
   0xc   : > { %s2197_s19 = scalar_select %p1851_p6, 1, 0 }
   0xd   : > { %p1856_p8 = pnand %p1456_p5, %p119_p7  ;;  %s131_s22 = sshll.u32 %s1778_s21, 4  ;;  %s1860_s22 = int_to_ptr.vmem [resolvable:$true] %s131_s22 }
   0xe   : > { %s1872_s24 = sadd.s32 1, %s1776_s15   ;;  %s27_s25 = sadd.s32 1, %s1772_s14 }
   0xf   : > { %s2198_s20 = scalar_select %p1856_p8, 1, 0 }
  0x10   : > { %p1566_p9 = pneg %p1856_p8  ;;  %s24_s26 = ssub.s32 %s1776_s15, %s1872_s24 }
  0x11   : > { %s1648_s29 = scalar_lea.hbm %s2190_s1, 256 }
  0x12   : > { %p1867_p11 = pnand %p1566_p9, %p2193_p1  ;;  %p1649_p12 = scmp.ne.s32.totalorder %s2190_s1, %s1648_s29 }
  0x13   : > { %p1655_p5 = scmp.lt.u32.totalorder %s1648_s29, %s2190_s1 }
  0x14   : > { %p1650_p13 = pneg %p1867_p11 }
  0x16   : > { %p1651_p0 = pnand %p1650_p13, %p1649_p12 }
  0x18   : > { %p1652_p3 = pneg %p1651_p0 }
  0x1a   : > { %p1657_p7 = pnand %p1655_p5, %p1652_p3 }
  0x1c   : > { %1660 = shalt.err (!%p1657_p7)
}
  0x1d   : > { %s1661_s7 = scalar_lea.vmem %s1860_s22, 256  ;;  %p1669_p2 = scmp.lt.s32.totalorder %s1860_s22, %s1860_s22 }
  0x1e   : > { %p1662_p9 = scmp.ne.s32.totalorder %s1860_s22, %s1661_s7  ;;  %p1670_p6 = scmp.lt.s32.totalorder %s1661_s7, %s1661_s7 }
  0x20   : > { %p1664_p10 = pnand %p1662_p9, %p1650_p13  ;;  %p1671_p4 = por %p1670_p6, %p1669_p2 }
  0x22   : > { %p1665_p1 = pneg %p1664_p10 }
  0x24   : > { %p1672_p8 = pnand %p1671_p4, %p1665_p1 }
  0x26   : > { %1675 = shalt.err (!%p1672_p8)
}
  0x27   : > { %s1779_s8 = smov 64   ;;  %s1780_s9 = smov 4  }
  0x28   : > { %1569 = dma.hbm_to_vmem [thread:$0]  (!%p1867_p11), %s2190_s1, 256, %s1860_s22, [#allocation6], %s1779_s8, %s1779_s8, %s1780_s9  }
  0x29   : > { %p25_p2 = scmp.eq.s32.totalorder %s24_s26, 0  ;;  %p34_p1 = scmp.ne.s32.totalorder %s1772_s14, %s1768_s13 }
  0x2a   : > { %p35_p4 = scmp.eq.s32.totalorder %s1776_s15, 0  ;;  %p1579_p6 = scmp.lt.s32.totalorder %s1776_s15, 2 }
  0x2b   : > { %s1903_s17 = scalar_select %p25_p2, %s1772_s14, %s27_s25  }
  0x2c   : > { %p36_p8 = por %p35_p4, %p34_p1  ;;  %p2200_p10 = scmp.eq.s32.totalorder %s1837_s16, 1 }
  0x2d   : > { %s148_s27 = sand.u32 1, %s1772_s14   ;;  %s1460_s28 = sshll.u32 %s1776_s15, 7 }
  0x2e   : > { %p1907_p12 = por %p2200_p10, %p34_p1  ;;  %s1459_s29 = sshll.u32 %s148_s27, 3 }
  0x2f   : > { %s1916_s4 = scalar_lea.hbm %s2189_s0, %s1460_s28  ;;  %s152_s22 = scalar_lea.vmem [#allocation2], %s1459_s29 }
  0x30   : > { %s159_s25 = sshll.u32 %s152_s22, 4  ;;  %p1918_p11 = pnand %p1579_p6, %p36_p8  ;;  %s1922_s25 = int_to_ptr.vmem [resolvable:$true] %s159_s25 }
  0x31   : > { %s149_s5 = scalar_lea.sflag [#allocation3], %s148_s27  ;;  %s1676_s6 = scalar_lea.hbm %s1916_s4, 128 }
  0x32   : > { %p1677_p13 = scmp.ne.s32.totalorder %s1916_s4, %s1676_s6  ;;  %p1678_p0 = pneg %p1918_p11 }
  0x33   : > { %s1681_s9 = scalar_lea.hbm %s2189_s0, 256  ;;  %p1682_p7 = scmp.lt.u32.totalorder %s1916_s4, %s2189_s0 }
  0x34   : > { %p1679_p3 = pnand %p1678_p0, %p1677_p13  ;;  %p1683_p9 = scmp.lt.u32.totalorder %s1681_s9, %s1676_s6 }
  0x35   : > { %p1685_p1 = scmp.lt.u32.totalorder %s1676_s6, %s1916_s4 }
  0x36   : > { %p1680_p5 = pneg %p1679_p3  ;;  %p1684_p2 = por %p1683_p9, %p1682_p7 }
  0x38   : > { %p1686_p4 = por %p1685_p1, %p1684_p2 }
  0x3a   : > { %p1687_p6 = pnand %p1686_p4, %p1680_p5 }
  0x3c   : > { %1690 = shalt.err (!%p1687_p6)
}
  0x3d   : > { %s1691_s27 = scalar_lea.vmem %s1922_s25, 128  ;;  %s1781_s28 = smov [#allocation2]  }
  0x3e   : > { %p1692_p8 = scmp.ne.s32.totalorder %s1922_s25, %s1691_s27  ;;  %s1696_s29 = sshll.u32 %s1781_s28, 4  ;;  %s1697_s29 = int_to_ptr.vmem [resolvable:$false] %s1696_s29 }
  0x3f   : > { %s1698_s23 = scalar_lea.vmem %s1697_s29, 256  ;;  %p1699_p3 = scmp.lt.s32.totalorder %s1922_s25, %s1697_s29 }
  0x40   : > { %p1694_p10 = pnand %p1692_p8, %p1678_p0  ;;  %p1700_p7 = scmp.lt.s32.totalorder %s1698_s23, %s1691_s27 }
  0x42   : > { %p1695_p13 = pneg %p1694_p10  ;;  %p1701_p9 = por %p1700_p7, %p1699_p3 }
  0x44   : > { %p1702_p2 = pnand %p1701_p9, %p1695_p13 }
  0x46   : > { %1705 = shalt.err (!%p1702_p2)
}
  0x47   : > { %1573 = dma.hbm_to_vmem [thread:$0]  (!%p1918_p11), %s1916_s4, 128, %s1922_s25, %s149_s5  }
  0x48   : > { %p2203_p5 = scmp.ne.s32.totalorder %s2198_s20, 0 }
  0x49   : > { %s1952_s30 = sand.u32 (!%p2203_p5), 1, %s1768_s13   ;;  %p2204_p0 = scmp.ne.s32.totalorder (!%p2203_p5), %s2196_s18, 0 }
  0x4a   : > { %168 = sbr.rel (%p2203_p5) target bundleno = 1528 (0x5f8), region = 32  ;;  %s1462_s22 = sshll.u32 (!%p2203_p5), %s1952_s30, 3 }
  0x4b   : > { %s171_s6 = scalar_lea.sflag (!%p2203_p5), [#allocation3], %s1952_s30  ;;  %s174_s7 = scalar_lea.vmem (!%p2203_p5), [#allocation2], %s1462_s22 }
  0x51   : > { %1751 = dma.done.wait (%p2204_p0), %s171_s6, 128  }
  0x52   : > { %1753 = vsyncadd (%p2204_p0), %s171_s6, 4294967168  ;;  %p2205_p11 = scmp.eq.s32.totalorder %s1837_s16, 0 }
  0x54   : > { %1755 = dma.done.wait (%p2205_p11), [#allocation6], 256   ;;  %p2206_p1 = pmov %p2205_p11 }
  0x55   : > { %v1782_v0 = vmov 0.0   ;;  %vm1783_vm0 = vmmov 0   ;;  %v1630_v1 = vld [vmem:[#allocation5] sm:$0xff]   ;;  %v1631_v2 = vld [vmem:[#allocation5 + $0x8] sm:$0xff]   ;;  %v202_v3 = vld [vmem:[%s174_s7] sm:$0xff]  ;;  %vm227_vm1 = vcmask 261120   ;;  %v284_v19 = vlaneseq }
  0x56   : > { %1757 = vsyncadd (%p2206_p1), [#allocation6], 4294967040  ;;  %1502 = vmatprep.subr.bf16.mxu0 %v1782_v0  ;;  %1506 = vmatprep.mubr.msk.bf16.mxu0 %vm1783_vm0, %v1782_v0  ;;  %v203_v4 = vpack.c.bf16 %v202_v3, %v202_v3  ;;  %v1465_v5 = vld [vmem:[%s2191_s2] ss:$0 sm:$0xff]  ;;  %s1784_s4 = smov 104   ;;  %s1785_s25 = smov 120  }
  0x57   : > { %1510 = vmatprep.subr.bf16.mxu1 %v1782_v0  ;;  %1512 = vmatprep.mubr.msk.bf16.mxu1 %vm1783_vm0, %v1782_v0  ;;  %s1786_s26 = smov 96   ;;  %s1787_s5 = smov 112   ;;  %v1788_v17 = vmov 1983009808   ;;  %v1789_v20 = vmov 1934713408  }
  0x58   : > { %1503 = vmatpush3.bf16.msra.mxu0 %v1630_v1  ;;  %v282_v18 = vunpack.c.l.s4 %v1788_v17  ;;  %v299_v21 = vunpack.c.l.s4 %v1789_v20  ;;  %v285_v23 = vshrl.u32 %v284_v19, 7  ;;  %v1790_v48 = vmov 0   ;;  %s1791_s8 = smov 64   ;;  %s1792_s9 = smov 16  }
  0x59   : > { %1504 = vmatprep.subr.bf16.mxu0 %v1782_v0  ;;  %vm789_vm2 = vcmask 64512   ;;  %vm1025_vm3 = vcmask 1043456   ;;  %s1793_s10 = smov 8   ;;  %s1794_s11 = smov 24   ;;  %vm1356_vm4 = vcmask 130048   ;;  %vm1358_vm5 = vcmask 195584  }
  0x5a   : > { %v283_v22 = vunpack.c.0.s8 %v282_v18  ;;  %v300_v26 = vunpack.c.0.s8 %v299_v21  ;;  %s1480_s27 = sshll.u32 %s1837_s16, 7  ;;  %s200_s28 = scalar_lea.vmem [#allocation7], %s1462_s22 }
  0x5b   : > { %s1375_s29 = sshll.u32 %s200_s28, 4  ;;  %s2144_s7 = scalar_lea.hbm %s2192_s3, %s1480_s27  ;;  %s2146_s29 = int_to_ptr.vmem [resolvable:$true] %s1375_s29 }
  0x5c   : > { %1505 = vmatpush3.bf16.msra.mxu0 %v1631_v2  ;;  %v1995_v27 = vsub.s32 %v283_v22, %v285_v23  ;;  %v1997_v28 = vsub.s32 %v300_v26, %v285_v23  ;;  %s1362_s16 = scalar_lea.sflag [#allocation4], %s1952_s30  ;;  %s1706_s18 = scalar_lea.vmem %s2146_s29, 128 }
  0x5d   : > { %1516 = vmatprep.subr.bf16.mxu0 %v1782_v0  ;;  %p1707_p4 = scmp.ne.s32.totalorder %s2146_s29, %s1706_s18  ;;  %s1795_s22 = smov [#allocation7]  }
  0x5e   : > { %s1710_s20 = sshll.u32 %s1795_s22, 4  ;;  %s1711_s20 = int_to_ptr.vmem [resolvable:$false] %s1710_s20 }
  0x5f   : > { %1507 = vmatmul.mubr.msk.bf16.vlgmr.msra.gmra.mrb[0].mxu0 %vm227_vm1, %v203_v4  ;;  %p1708_p6 = pnand %p1707_p4, %p1907_p12  ;;  %p1713_p10 = scmp.lt.s32.totalorder %s2146_s29, %s1711_s20 }
  0x60   : > { %1518 = vmatprep.mubr.msk.bf16.mxu0 %vm1783_vm0, %v1782_v0 }
  0x61   : > { %p1709_p8 = pneg %p1708_p6 }
 0x132   : > { %v265_v6 = vpop.f32.mrb[0].mxu0 }
 0x133   : > { %v266_v7 = vadd.f32 %v1465_v5, %v265_v6  ;;  %v1508_v8 = vpop.f32.mrb[1].mxu0 }
 0x134   : > { %v268_v9 = vpop.f32.mrb[2].mxu0 }
 0x135   : > { %v1980_v10 = vpack.c.bf16 %v266_v7, %v266_v7  ;;  %v1509_v11 = vpop.f32.mrb[3].mxu0  ;;  %v271_v13 = vmul.f32 0.35355338, %v266_v7 }
 0x137   : > { %447 = vrot.lane.b32.xlu1 %v1980_v10, %s1784_s4  ;;  %443 = vrot.lane.b32.xlu0 %v1980_v10, %s1785_s25  ;;  %v272_v16 = vpack.c.bf16 %v271_v13, %v271_v13 }
 0x139   : > { %v287_v45 = vrot.slane %v272_v16, %v1995_v27 }
 0x13b   : > { %449 = vrot.lane.b32.xlu1 %v1980_v10, %s1786_s26  ;;  %445 = vrot.lane.b32.xlu0 %v1980_v10, %s1787_s5 }
 0x1a9   : > { %v1986_v12 = vpop.permute.xlu0 %443  ;;  %v1989_v14 = vpop.permute.xlu1 %447 }
 0x1aa   : > { %451 = vrot.lane.b32.xlu0 %v1986_v12, %s1786_s26 }
 0x1ad   : > { %v1991_v15 = vpop.permute.xlu0 %445  ;;  %v450_v24 = vpop.permute.xlu1 %449 }
 0x1ae   : > { %455 = vrot.lane.b32.xlu0 %v1989_v14, %s1786_s26  ;;  %453 = vrot.lane.b32.xlu1 %v1991_v15, %s1786_s26  ;;  %v464_v31 = vrot.slane %v450_v24, %v1995_v27 }
 0x1b2   : > { %277 = vrot.lane.b32.xlu0 %v272_v16, %s1787_s5  ;;  %275 = vrot.lane.b32.xlu1 %v272_v16, %s1785_s25 }
 0x1b6   : > { %279 = vrot.lane.b32.xlu1 %v272_v16, %s1784_s4  ;;  %s1712_s4 = scalar_lea.vmem %s1711_s20, 256 }
 0x1b7   : > { %p1714_p13 = scmp.lt.s32.totalorder %s1712_s4, %s1706_s18 }
 0x1b9   : > { %p1715_p3 = por %p1714_p13, %p1713_p10 }
 0x1bb   : > { %p1716_p7 = pnand %p1715_p3, %p1709_p8 }
 0x21c   : > { %v452_v25 = vpop.permute.xlu0 %451 }
 0x21d   : > { %v498_v32 = vrot.slane %v452_v25, %v1995_v27 }
 0x220   : > { %v454_v29 = vpop.permute.xlu1 %453  ;;  %v456_v30 = vpop.permute.xlu0 %455 }
 0x221   : > { %v472_v33 = vrot.slane %v454_v29, %v1995_v27  ;;  %v506_v34 = vrot.slane %v456_v30, %v1995_v27 }
 0x223   : > { %v473_v35 = vcombine.low %v464_v31, %v472_v33  ;;  %v474_v36 = vcombine.high %v464_v31, %v472_v33  ;;  %v507_v37 = vcombine.low %v498_v32, %v506_v34  ;;  %v508_v38 = vcombine.high %v498_v32, %v506_v34 }
 0x224   : > { %v278_v39 = vpop.permute.xlu0 %277  ;;  %v276_v40 = vpop.permute.xlu1 %275 }
 0x225   : > { %v481_v41 = vrot.slane %v473_v35, %v1997_v28  ;;  %v488_v42 = vrot.slane %v474_v36, %v1997_v28  ;;  %v515_v43 = vrot.slane %v507_v37, %v1997_v28  ;;  %v522_v44 = vrot.slane %v508_v38, %v1997_v28 }
 0x226   : > { %v295_v46 = vrot.slane %v278_v39, %v1995_v27  ;;  %v321_v47 = vrot.slane %v276_v40, %v1995_v27 }
 0x227   : > { %v489_v49 = vcombine.high %v481_v41, %v1790_v48  ;;  %v490_v50 = vcombine.high %v488_v42, %v1790_v48  ;;  %v529_v51 = vshrl.u32 %v481_v41, 16  ;;  %v545_v52 = vshrl.u32 %v488_v42, 16 }
 0x228   : > { %v523_v53 = vcombine.high %v515_v43, %v1790_v48  ;;  %v524_v54 = vcombine.high %v522_v44, %v1790_v48  ;;  %v527_v55 = vpack.i.b16 %v515_v43, %v481_v41  ;;  %v530_v56 = vshrl.u32 %v515_v43, 16  ;;  %v280_v61 = vpop.permute.xlu1 %279 }
 0x229   : > { %v537_v57 = vshrl.u32 %v489_v49, 16  ;;  %v553_v58 = vshrl.u32 %v490_v50, 16  ;;  %v543_v59 = vpack.i.b16 %v522_v44, %v488_v42  ;;  %v546_v60 = vshrl.u32 %v522_v44, 16 }
 0x22a   : > { %v531_v62 = vpack.i.b16 %v530_v56, %v529_v51  ;;  %v535_v63 = vpack.i.b16 %v523_v53, %v489_v49  ;;  %v538_v1 = vshrl.u32 %v523_v53, 16  ;;  %v551_v2 = vpack.i.b16 %v524_v54, %v490_v50 }
 0x22b   : > { %v547_v3 = vpack.i.b16 %v546_v60, %v545_v52  ;;  %v554_v4 = vshrl.u32 %v524_v54, 16  ;;  %v557_v5 = vcombine.low %v527_v55, %v543_v59  ;;  %v296_v6 = vcombine.low %v287_v45, %v295_v46 }
 0x22c   : > { %v539_v7 = vpack.i.b16 %v538_v1, %v537_v57  ;;  %v297_v8 = vcombine.high %v287_v45, %v295_v46  ;;  %v329_v9 = vrot.slane %v280_v61, %v1995_v27  ;;  %v565_v11 = vcombine.low %v535_v63, %v551_v2 }
 0x22d   : > { %v555_v13 = vpack.i.b16 %v554_v4, %v553_v58  ;;  %v304_v16 = vrot.slane %v296_v6, %v1997_v28  ;;  %v582_v17 = vcombine.low %v531_v62, %v547_v3  ;;  %v564_v24 = vrot.slane %v557_v5, %v1995_v27 }
 0x22e   : > { %v311_v18 = vrot.slane %v297_v8, %v1997_v28  ;;  %v330_v19 = vcombine.low %v321_v47, %v329_v9  ;;  %v331_v20 = vcombine.high %v321_v47, %v329_v9  ;;  %v572_v21 = vrot.slane %v565_v11, %v1995_v27 }
 0x22f   : > { %v312_v22 = vcombine.high %v304_v16, %v1790_v48  ;;  %v352_v23 = vshrl.u32 %v304_v16, 16  ;;  %v590_v25 = vcombine.low %v539_v7, %v555_v13  ;;  %v589_v31 = vrot.slane %v582_v17, %v1995_v27 }
 0x230   : > { %v313_v26 = vcombine.high %v311_v18, %v1790_v48  ;;  %v338_v29 = vrot.slane %v330_v19, %v1997_v28  ;;  %v345_v30 = vrot.slane %v331_v20, %v1997_v28  ;;  %v368_v33 = vshrl.u32 %v311_v18, 16 }
 0x231   : > { %v360_v32 = vshrl.u32 %v312_v22, 16  ;;  %v573_v34 = vcombine.low %v564_v24, %v572_v21  ;;  %v597_v35 = vrot.slane %v590_v25, %v1995_v27 }
 0x232   : > { %v376_v36 = vshrl.u32 %v313_v26, 16  ;;  %v346_v37 = vcombine.high %v338_v29, %v1790_v48  ;;  %v347_v38 = vcombine.high %v345_v30, %v1790_v48  ;;  %v350_v39 = vpack.i.b16 %v338_v29, %v304_v16 }
 0x233   : > { %v353_v40 = vshrl.u32 %v338_v29, 16  ;;  %v366_v41 = vpack.i.b16 %v345_v30, %v311_v18  ;;  %v369_v42 = vshrl.u32 %v345_v30, 16  ;;  %v580_v43 = vrot.slane %v573_v34, %v1997_v28 }
 0x234   : > { %v358_v44 = vpack.i.b16 %v346_v37, %v312_v22  ;;  %v361_v45 = vshrl.u32 %v346_v37, 16  ;;  %v374_v46 = vpack.i.b16 %v347_v38, %v313_v26  ;;  %v377_v47 = vshrl.u32 %v347_v38, 16 }
 0x235   : > { %v354_v49 = vpack.i.b16 %v353_v40, %v352_v23  ;;  %v370_v50 = vpack.i.b16 %v369_v42, %v368_v33  ;;  %v380_v51 = vcombine.low %v350_v39, %v366_v41  ;;  %v598_v52 = vcombine.low %v589_v31, %v597_v35 }
 0x236   : > { %v362_v53 = vpack.i.b16 %v361_v45, %v360_v32  ;;  %v378_v54 = vpack.i.b16 %v377_v47, %v376_v36  ;;  %v388_v55 = vcombine.low %v358_v44, %v374_v46  ;;  %v610_v62 = vshrl.u32 %v580_v43, 16 }
 0x237   : > { %v405_v56 = vcombine.low %v354_v49, %v370_v50  ;;  %v605_v57 = vrot.slane %v598_v52, %v1997_v28  ;;  %v387_v58 = vrot.slane %v380_v51, %v1995_v27  ;;  %v581_v7 = vcombine.high %v580_v43, %v1790_v48 }
 0x238   : > { %v395_v59 = vrot.slane %v388_v55, %v1995_v27  ;;  %v413_v60 = vcombine.low %v362_v53, %v378_v54 }
 0x239   : > { %v609_v61 = vpack.i.b16 %v605_v57, %v580_v43  ;;  %v611_v63 = vshrl.u32 %v605_v57, 16  ;;  %v606_v1 = vcombine.high %v605_v57, %v1790_v48  ;;  %v412_v2 = vrot.slane %v405_v56, %v1995_v27 }
 0x23a   : > { %v396_v3 = vcombine.low %v387_v58, %v395_v59  ;;  %v420_v4 = vrot.slane %v413_v60, %v1995_v27  ;;  %v616_v18 = vshrl.u32 %v581_v7, 16 }
 0x23b   : > { %v794_v5 = vsel %vm789_vm2, %v609_v61, 0  ;;  %v612_v6 = vpack.i.b16 %v611_v63, %v610_v62  ;;  %v617_v13 = vshrl.u32 %v606_v1, 16  ;;  %v615_v17 = vpack.i.b16 %v606_v1, %v581_v7 }
 0x23c   : > { %1511 = vmatpush3.bf16.xpose.msra.mxu1 %v794_v5  ;;  %v403_v8 = vrot.slane %v396_v3, %v1997_v28  ;;  %v421_v9 = vcombine.low %v412_v2, %v420_v4 }
 0x23d   : > { %v840_v11 = vsel %vm789_vm2, %v612_v6, 0  ;;  %1522 = vmatprep.subr.bf16.mxu1 %v1782_v0  ;;  %v618_v22 = vpack.i.b16 %v617_v13, %v616_v18  ;;  %v886_v24 = vsel %vm789_vm2, %v615_v17, 0 }
 0x23e   : > { %1517 = vmatpush3.bf16.xpose.msra.mxu0 %v840_v11  ;;  %v428_v16 = vrot.slane %v421_v9, %v1997_v28  ;;  %v433_v20 = vshrl.u32 %v403_v8, 16  ;;  %v404_v29 = vcombine.high %v403_v8, %v1790_v48 }
 0x23f   : > { %1528 = vmatprep.subr.bf16.mxu0 %v1782_v0  ;;  %v932_v26 = vsel %vm789_vm2, %v618_v22, 0 }
 0x240   : > { %v432_v19 = vpack.i.b16 %v428_v16, %v403_v8  ;;  %v434_v21 = vshrl.u32 %v428_v16, 16  ;;  %v429_v25 = vcombine.high %v428_v16, %v1790_v48  ;;  %v439_v32 = vshrl.u32 %v404_v29, 16 }
 0x242   : > { %v435_v23 = vpack.i.b16 %v434_v21, %v433_v20  ;;  %v440_v30 = vshrl.u32 %v429_v25, 16  ;;  %v438_v31 = vpack.i.b16 %v429_v25, %v404_v29 }
 0x243   : > { %1513 = vmatmul.mubr.msk.bf16.vlgmr.msra.gmra.mrb[0].mxu1 %vm789_vm2, %v432_v19 }
 0x244   : > { %1523 = vmatpush3.bf16.xpose.msra.mxu1 %v886_v24  ;;  %1524 = vmatprep.mubr.msk.bf16.mxu1 %vm1783_vm0, %v1782_v0  ;;  %v441_v33 = vpack.i.b16 %v440_v30, %v439_v32 }
 0x245   : > { %1519 = vmatmul.mubr.msk.bf16.vlgmr.msra.gmra.mrb[4].mxu0 %vm789_vm2, %v435_v23  ;;  %1534 = vmatprep.subr.bf16.mxu1 %v1782_v0 }
 0x246   : > { %1529 = vmatpush3.bf16.xpose.msra.mxu0 %v932_v26  ;;  %1530 = vmatprep.mubr.msk.bf16.mxu0 %vm1783_vm0, %v1782_v0 }
 0x247   : > { %1540 = vmatprep.subr.bf16.mxu0 %v1782_v0 }
 0x24b   : > { %1525 = vmatmul.mubr.msk.bf16.vlgmr.msra.gmra.mrb[4].mxu1 %vm789_vm2, %v438_v31 }
 0x24c   : > { %1536 = vmatprep.mubr.msk.bf16.mxu1 %vm1783_vm0, %v1782_v0 }
 0x24d   : > { %1531 = vmatmul.mubr.msk.bf16.vlgmr.msra.gmra.mrb[8].mxu0 %vm789_vm2, %v441_v33 }
 0x24e   : > { %1542 = vmatprep.mubr.msk.bf16.mxu0 %vm1783_vm0, %v1782_v0 }
 0x316   : > { %v830_v34 = vpop.f32.mrb[0].mxu1 }
 0x317   : > { %v1514_v35 = vpop.f32.mrb[1].mxu1  ;;  %v974_v36 = vsel %vm789_vm2, %v830_v34, -inf }
 0x318   : > { %975 = vmax.xlane.f32.xlu0 %v974_v36  ;;  %v833_v37 = vpop.f32.mrb[2].mxu1  ;;  %v876_v38 = vpop.f32.mrb[4].mxu0 }
 0x319   : > { %v1515_v39 = vpop.f32.mrb[3].mxu1  ;;  %v1520_v40 = vpop.f32.mrb[5].mxu0  ;;  %v977_v41 = vsel %vm789_vm2, %v876_v38, -inf }
 0x31a   : > { %978 = vmax.xlane.f32.xlu1 %v977_v41  ;;  %v879_v42 = vpop.f32.mrb[6].mxu0 }
 0x31b   : > { %v1521_v43 = vpop.f32.mrb[7].mxu0 }
 0x31e   : > { %v922_v44 = vpop.f32.mrb[4].mxu1 }
 0x31f   : > { %v1526_v45 = vpop.f32.mrb[5].mxu1  ;;  %v980_v46 = vsel %vm789_vm2, %v922_v44, -inf }
 0x320   : > { %981 = vmax.xlane.f32.xlu0 %v980_v46  ;;  %v925_v47 = vpop.f32.mrb[6].mxu1  ;;  %v968_v49 = vpop.f32.mrb[8].mxu0 }
 0x321   : > { %v1527_v50 = vpop.f32.mrb[7].mxu1  ;;  %v1532_v51 = vpop.f32.mrb[9].mxu0  ;;  %v983_v54 = vsel %vm789_vm2, %v968_v49, -inf }
 0x322   : > { %v971_v52 = vpop.f32.mrb[10].mxu0 }
 0x323   : > { %v1533_v53 = vpop.f32.mrb[11].mxu0 }
 0x324   : > { %984 = vmax.xlane.f32.xlu0 %v983_v54 }
 0x32b   : > { %619 = vrot.lane.b32.xlu1 %v1980_v10, %s1791_s8 }
 0x3a5   : > { %v976_v55 = vpop.xlane.xlu0 %975 }
 0x3a6   : > { %v986_v56 = vsub.f32 %v830_v34, %v976_v55 }
 0x3a7   : > { %v979_v57 = vpop.xlane.xlu1 %978 }
 0x3a8   : > { %v990_v58 = vmul.f32 1.442695, %v986_v56  ;;  %v987_v59 = vsub.f32 %v876_v38, %v979_v57 }
 0x3aa   : > { %1632 = vpow2.f32 %v990_v58  ;;  %v992_v60 = vmul.f32 1.442695, %v987_v59 }
 0x3ac   : > { %1634 = vpow2.f32 %v992_v60 }
 0x3ad   : > { %v982_v10 = vpop.xlane.xlu0 %981 }
 0x3ae   : > { %v988_v3 = vsub.f32 %v922_v44, %v982_v10 }
 0x3b0   : > { %v994_v5 = vmul.f32 1.442695, %v988_v3 }
 0x3b1   : > { %v985_v2 = vpop.xlane.xlu0 %984 }
 0x3b2   : > { %v989_v4 = vsub.f32 %v968_v49, %v985_v2  ;;  %1636 = vpow2.f32 %v994_v5 }
 0x3b4   : > { %v2064_v61 = vpop.eup %1632  ;;  %v996_v6 = vmul.f32 1.442695, %v989_v4 }
 0x3b5   : > { %v998_v62 = vsel %vm789_vm2, %v2064_v61, 0.0 }
 0x3b6   : > { %v2068_v63 = vpop.eup %1634  ;;  %999 = vadd.xlane.f32.xlu1 %v998_v62  ;;  %1638 = vpow2.f32 %v996_v6 }
 0x3b7   : > { %v1001_v1 = vsel %vm789_vm2, %v2068_v63, 0.0 }
 0x3b8   : > { %1002 = vadd.xlane.f32.xlu0 %v1001_v1 }
 0x3bc   : > { %v2075_v7 = vpop.eup %1636 }
 0x3bd   : > { %v1004_v9 = vsel %vm789_vm2, %v2075_v7, 0.0 }
 0x3c0   : > { %v2077_v8 = vpop.eup %1638 }
 0x3c7   : > { %623 = vrot.lane.b32.xlu1 %v1991_v15, %s1791_s8 }
 0x3cb   : > { %625 = vrot.lane.b32.xlu1 %v1989_v14, %s1791_s8  ;;  %v1007_v14 = vsel %vm789_vm2, %v2077_v8, 0.0 }
 0x3ce   : > { %621 = vrot.lane.b32.xlu0 %v1986_v12, %s1791_s8  ;;  %v620_v12 = vpop.permute.xlu1 %619 }
 0x3cf   : > { %v634_v16 = vrot.slane %v620_v12, %v1995_v27 }
 0x3ed   : > { %1005 = vadd.xlane.f32.xlu0 %v1004_v9 }
 0x3ef   : > { %1008 = vadd.xlane.f32.xlu1 %v1007_v14 }
 0x443   : > { %v1000_v15 = vpop.xlane.xlu1 %999 }
 0x444   : > { %1640 = vrcp.f32 %v1000_v15 }
 0x445   : > { %v1003_v11 = vpop.xlane.xlu0 %1002 }
 0x446   : > { %1642 = vrcp.f32 %v1003_v11 }
 0x447   : > { %v624_v13 = vpop.permute.xlu1 %623 }
 0x448   : > { %v642_v17 = vrot.slane %v624_v13, %v1995_v27 }
 0x449   : > { %v622_v20 = vpop.permute.xlu0 %621 }
 0x44a   : > { %v643_v18 = vcombine.low %v634_v16, %v642_v17  ;;  %v644_v19 = vcombine.high %v634_v16, %v642_v17  ;;  %v668_v24 = vrot.slane %v622_v20, %v1995_v27 }
 0x44b   : > { %v626_v21 = vpop.permute.xlu1 %625 }
 0x44c   : > { %v651_v22 = vrot.slane %v643_v18, %v1997_v28  ;;  %v676_v23 = vrot.slane %v626_v21, %v1995_v27  ;;  %v658_v25 = vrot.slane %v644_v19, %v1997_v28 }
 0x44e   : > { %v677_v26 = vcombine.low %v668_v24, %v676_v23  ;;  %v678_v29 = vcombine.high %v668_v24, %v676_v23  ;;  %v659_v30 = vcombine.high %v651_v22, %v1790_v48  ;;  %v660_v33 = vcombine.high %v658_v25, %v1790_v48  ;;  %v1641_v59 = vpop.eup %1640 }
 0x44f   : > { %v699_v34 = vshrl.u32 %v651_v22, 16  ;;  %v715_v40 = vshrl.u32 %v658_v25, 16  ;;  %v1014_v6 = vmul.f32 %v1641_v59, %v2064_v61 }
 0x450   : > { %v685_v31 = vrot.slane %v677_v26, %v1997_v28  ;;  %v692_v32 = vrot.slane %v678_v29, %v1997_v28  ;;  %v707_v39 = vshrl.u32 %v659_v30, 16  ;;  %v723_v47 = vshrl.u32 %v660_v33, 16  ;;  %v1643_v62 = vpop.eup %1642 }
 0x451   : > { %v1015_v11 = vmul.f32 %v1643_v62, %v2068_v63  ;;  %v1018_v21 = vpack.c.bf16 %v1014_v6, %v1014_v6 }
 0x452   : > { %v693_v35 = vcombine.high %v685_v31, %v1790_v48  ;;  %v694_v36 = vcombine.high %v692_v32, %v1790_v48  ;;  %v697_v37 = vpack.i.b16 %v685_v31, %v651_v22  ;;  %v700_v38 = vshrl.u32 %v685_v31, 16 }
 0x453   : > { %v713_v41 = vpack.i.b16 %v692_v32, %v658_v25  ;;  %v716_v42 = vshrl.u32 %v692_v32, 16  ;;  %v1019_v22 = vpack.c.bf16 %v1015_v11, %v1015_v11 }
 0x454   : > { %v701_v43 = vpack.i.b16 %v700_v38, %v699_v34  ;;  %v705_v44 = vpack.i.b16 %v693_v35, %v659_v30  ;;  %v708_v45 = vshrl.u32 %v693_v35, 16  ;;  %v721_v46 = vpack.i.b16 %v694_v36, %v660_v33 }
 0x455   : > { %v717_v49 = vpack.i.b16 %v716_v42, %v715_v40  ;;  %v724_v50 = vshrl.u32 %v694_v36, 16  ;;  %v727_v51 = vcombine.low %v697_v37, %v713_v41 }
 0x456   : > { %v709_v52 = vpack.i.b16 %v708_v45, %v707_v39  ;;  %v735_v53 = vcombine.low %v705_v44, %v721_v46 }
 0x457   : > { %v725_v54 = vpack.i.b16 %v724_v50, %v723_v47  ;;  %v752_v55 = vcombine.low %v701_v43, %v717_v49  ;;  %v734_v56 = vrot.slane %v727_v51, %v1995_v27 }
 0x458   : > { %v742_v57 = vrot.slane %v735_v53, %v1995_v27 }
 0x459   : > { %v760_v58 = vcombine.low %v709_v52, %v725_v54  ;;  %v759_v1 = vrot.slane %v752_v55, %v1995_v27 }
 0x45a   : > { %v743_v60 = vcombine.low %v734_v56, %v742_v57 }
 0x45b   : > { %v767_v10 = vrot.slane %v760_v58, %v1995_v27 }
 0x45c   : > { %v750_v2 = vrot.slane %v743_v60, %v1997_v28 }
 0x45d   : > { %v768_v3 = vcombine.low %v759_v1, %v767_v10 }
 0x45e   : > { %v751_v4 = vcombine.high %v750_v2, %v1790_v48  ;;  %v780_v14 = vshrl.u32 %v750_v2, 16 }
 0x45f   : > { %v775_v5 = vrot.slane %v768_v3, %v1997_v28 }
 0x460   : > { %v786_v13 = vshrl.u32 %v751_v4, 16 }
 0x461   : > { %v779_v9 = vpack.i.b16 %v775_v5, %v750_v2  ;;  %v781_v12 = vshrl.u32 %v775_v5, 16  ;;  %v776_v15 = vcombine.high %v775_v5, %v1790_v48 }
 0x463   : > { %v1027_v16 = vsel %vm1025_vm3, %v779_v9, 0  ;;  %v782_v17 = vpack.i.b16 %v781_v12, %v780_v14  ;;  %v785_v18 = vpack.i.b16 %v776_v15, %v751_v4  ;;  %v787_v19 = vshrl.u32 %v776_v15, 16 }
 0x464   : > { %1535 = vmatpush3.bf16.msra.mxu1 %v1027_v16 }
 0x465   : > { %v1073_v20 = vsel %vm1025_vm3, %v782_v17, 0  ;;  %1546 = vmatprep.subr.bf16.mxu1 %v1782_v0  ;;  %v788_v61 = vpack.i.b16 %v787_v19, %v786_v13  ;;  %v1119_v48 = vsel %vm1025_vm3, %v785_v18, 0 }
 0x466   : > { %1541 = vmatpush3.bf16.msra.mxu0 %v1073_v20 }
 0x467   : > { %1537 = vmatmul.mubr.msk.bf16.vlgmr.msra.gmra.mrb[8].mxu1 %vm789_vm2, %v1018_v21  ;;  %1552 = vmatprep.subr.bf16.mxu0 %v1782_v0  ;;  %v1165_v63 = vsel %vm1025_vm3, %v788_v61, 0 }
 0x468   : > { %1547 = vmatpush3.bf16.msra.mxu1 %v1119_v48  ;;  %1548 = vmatprep.mubr.msk.bf16.mxu1 %vm1783_vm0, %v1782_v0 }
 0x469   : > { %1543 = vmatmul.mubr.msk.bf16.vlgmr.msra.gmra.mrb[12].mxu0 %vm789_vm2, %v1019_v22 }
 0x46a   : > { %1553 = vmatpush3.bf16.msra.mxu0 %v1165_v63  ;;  %1554 = vmatprep.mubr.msk.bf16.mxu0 %vm1783_vm0, %v1782_v0 }
 0x47a   : > { %v1006_v23 = vpop.xlane.xlu0 %1005 }
 0x47b   : > { %1644 = vrcp.f32 %v1006_v23 }
 0x47c   : > { %v1009_v24 = vpop.xlane.xlu1 %1008 }
 0x47d   : > { %1646 = vrcp.f32 %v1009_v24 }
 0x485   : > { %v1645_v25 = vpop.eup %1644 }
 0x486   : > { %v1016_v26 = vmul.f32 %v1645_v25, %v2075_v7 }
 0x487   : > { %v1647_v29 = vpop.eup %1646 }
 0x488   : > { %v1017_v30 = vmul.f32 %v1647_v29, %v2077_v8  ;;  %v1020_v31 = vpack.c.bf16 %v1016_v26, %v1016_v26 }
 0x48a   : > { %1549 = vmatmul.mubr.msk.bf16.vlgmr.msra.gmra.mrb[12].mxu1 %vm789_vm2, %v1020_v31  ;;  %v1021_v32 = vpack.c.bf16 %v1017_v30, %v1017_v30 }
 0x48c   : > { %1555 = vmatmul.mubr.msk.bf16.vlgmr.msra.gmra.mrb[16].mxu0 %vm789_vm2, %v1021_v32 }
 0x53a   : > { %v1063_v33 = vpop.f32.mrb[8].mxu1 }
 0x53b   : > { %v1538_v34 = vpop.f32.mrb[9].mxu1 }
 0x53c   : > { %v1066_v35 = vpop.f32.mrb[10].mxu1  ;;  %v1109_v0 = vpop.f32.mrb[12].mxu0 }
 0x53d   : > { %v1539_v36 = vpop.f32.mrb[11].mxu1  ;;  %v1544_v37 = vpop.f32.mrb[13].mxu0 }
 0x53e   : > { %v1112_v38 = vpop.f32.mrb[14].mxu0 }
 0x53f   : > { %v1545_v39 = vpop.f32.mrb[15].mxu0 }
 0x55d   : > { %v1155_v40 = vpop.f32.mrb[12].mxu1 }
 0x55e   : > { %v1207_v41 = vcombine.low %v1063_v33, %v1155_v40  ;;  %v1208_v7 = vcombine.high %v1063_v33, %v1155_v40  ;;  %v1550_v42 = vpop.f32.mrb[13].mxu1 }
 0x55f   : > { %v1158_v43 = vpop.f32.mrb[14].mxu1  ;;  %v1201_v8 = vpop.f32.mrb[16].mxu0 }
 0x560   : > { %v1223_v44 = vcombine.low %v1109_v0, %v1201_v8  ;;  %v1224_v45 = vcombine.high %v1109_v0, %v1201_v8  ;;  %v1551_v46 = vpop.f32.mrb[15].mxu1  ;;  %v1556_v47 = vpop.f32.mrb[17].mxu0  ;;  %v1215_v50 = vrot.slane %v1207_v41, %v1995_v27  ;;  %v1222_v51 = vrot.slane %v1208_v7, %v1995_v27 }
 0x561   : > { %v1204_v49 = vpop.f32.mrb[18].mxu0 }
 0x562   : > { %v1231_v52 = vrot.slane %v1223_v44, %v1995_v27  ;;  %v1238_v53 = vrot.slane %v1224_v45, %v1995_v27  ;;  %v1557_v54 = vpop.f32.mrb[19].mxu0 }
 0x564   : > { %v1239_v55 = vcombine.low %v1215_v50, %v1231_v52  ;;  %v1240_v56 = vcombine.high %v1215_v50, %v1231_v52  ;;  %v1255_v57 = vcombine.low %v1222_v51, %v1238_v53  ;;  %v1256_v58 = vcombine.high %v1222_v51, %v1238_v53 }
 0x566   : > { %v1247_v59 = vrot.slane %v1239_v55, %v1997_v28  ;;  %v1254_v60 = vrot.slane %v1240_v56, %v1997_v28  ;;  %v1263_v62 = vrot.slane %v1255_v57, %v1997_v28  ;;  %v1270_v1 = vrot.slane %v1256_v58, %v1997_v28 }
 0x568   : > { %v1275_v10 = vcombine.low %v1247_v59, %v1254_v60  ;;  %v1477_v2 = vcombine.high %v1247_v59, %v1254_v60  ;;  %v1291_v3 = vcombine.low %v1263_v62, %v1270_v1  ;;  %v1478_v4 = vcombine.high %v1263_v62, %v1270_v1 }
 0x56a   : > { %v1282_v5 = vrot.slane %v1275_v10, %v1995_v27  ;;  %v1290_v6 = vrot.slane %v1477_v2, %v1995_v27  ;;  %v1298_v9 = vrot.slane %v1291_v3, %v1995_v27  ;;  %v1306_v14 = vrot.slane %v1478_v4, %v1995_v27 }
 0x56c   : > { %v1308_v12 = vcombine.high %v1282_v5, %v1290_v6  ;;  %v1324_v15 = vcombine.high %v1298_v9, %v1306_v14  ;;  %v1307_v11 = vcombine.low %v1282_v5, %v1290_v6  ;;  %v1323_v13 = vcombine.low %v1298_v9, %v1306_v14 }
 0x56e   : > { %v1322_v16 = vrot.slane %v1308_v12, %v1997_v28  ;;  %v1338_v17 = vrot.slane %v1324_v15, %v1997_v28  ;;  %v1315_v18 = vrot.slane %v1307_v11, %v1997_v28  ;;  %v1331_v19 = vrot.slane %v1323_v13, %v1997_v28 }
 0x570   : > { %v1341_v20 = vcombine.low %v1322_v16, %v1338_v17  ;;  %v1340_v21 = vcombine.high %v1315_v18, %v1331_v19  ;;  %v1342_v61 = vcombine.high %v1322_v16, %v1338_v17  ;;  %v1339_v48 = vcombine.low %v1315_v18, %v1331_v19 }
 0x572   : > { %1348 = vrot.lane.b32.xlu1 %v1341_v20, %s1792_s9  ;;  %1344 = vrot.lane.b32.xlu0 %v1340_v21, %s1793_s10 }
 0x576   : > { %1352 = vrot.lane.b32.xlu0 %v1342_v61, %s1794_s11 }
 0x5e4   : > { %v1345_v27 = vpop.permute.xlu0 %1344  ;;  %v1349_v22 = vpop.permute.xlu1 %1348 }
 0x5e5   : > { %v1355_v63 = vsel %vm789_vm2, %v1339_v48, %v1345_v27 }
 0x5e6   : > { %v1357_v23 = vsel %vm1356_vm4, %v1355_v63, %v1349_v22 }
 0x5e8   : > { %v1353_v28 = vpop.permute.xlu0 %1352 }
 0x5e9   : > { %v1359_v24 = vsel %vm1358_vm5, %v1357_v23, %v1353_v28 }
 0x5ea   : > { %1360 = vst.msk [vmem:[%s200_s28] sm:$0xff] %vm227_vm1, %v1359_v24 }
 0x5eb   : > { %1719 = shalt.err (!%p1716_p7)
}
 0x5ec   : > { %s1720_s30 = scalar_lea.hbm %s2144_s7, 128  ;;  %s1724_s5 = scalar_lea.hbm %s2192_s3, 256 }
 0x5ed   : > { %p1721_p9 = scmp.ne.s32.totalorder %s2144_s7, %s1720_s30  ;;  %p1725_p0 = scmp.lt.u32.totalorder %s2144_s7, %s2192_s3 }
 0x5ee   : > { %p1726_p11 = scmp.lt.u32.totalorder %s1724_s5, %s1720_s30  ;;  %p1728_p4 = scmp.lt.u32.totalorder %s1720_s30, %s2144_s7 }
 0x5ef   : > { %p1722_p2 = pnand %p1721_p9, %p1907_p12 }
 0x5f0   : > { %p1727_p1 = por %p1726_p11, %p1725_p0 }
 0x5f1   : > { %p1723_p5 = pneg %p1722_p2 }
 0x5f2   : > { %p1729_p6 = por %p1728_p4, %p1727_p1 }
 0x5f4   : > { %p1730_p8 = pnand %p1729_p6, %p1723_p5 }
 0x5f6   : > { %1733 = shalt.err (!%p1730_p8)
}
 0x5f7   : > { %1564 = dma.vmem_to_hbm [thread:$0]  (%p1907_p12), %s2146_s29, 128, %s2144_s7, %s1362_s16  }
 0x5f8 PF: > { %s1387_s10 = sand.u32 1, %s1764_s12   ;;  %p2207_p10 = scmp.ne.s32.totalorder %s2197_s19, 0 }
 0x5f9   : > { %p2208_p13 = scmp.ge.s32.totalorder %s1776_s15, 2  ;;  %s1388_s11 = scalar_lea.sflag [#allocation4], %s1387_s10 }
 0x5fb   : > { %p1575_p3 = pnand %p2208_p13, %p2207_p10 }
 0x5fd   : > { %1759 = dma.done.wait (!%p1575_p3), %s1388_s11, 128  }
 0x5fe   : > { %1761 = vsyncadd (!%p1575_p3), %s1388_s11, 4294967168  ;;  %p17_p7 = scmp.ge.s32.totalorder %s1872_s24, 4   ;;  %s2209_s12 = smov %s1768_s13 }
 0x5ff   : > { %s2210_s13 = smov %s1772_s14  ;;  %s2211_s14 = smov %s1903_s17 }
 0x600   : > { %s2212_s15 = smov %s1872_s24  ;;  %19 = sbr.rel (!%p17_p7) target bundleno = 6 (0x6), region = 81 }
 0x607   :  { %1393 = vsyncpa [#allocation3], 1 }
 0x608   :  { %1395 = vsyncpa [#allocation3 + $0x1], 1 }
 0x609   :  { %1396 = vsyncpa [#allocation6], 1 }
 0x60a   :  { %1397 = vsyncpa [#allocation4], 1 }
 0x60b   :  { %1399 = vsyncpa [#allocation4 + $0x1], 1 }

</bundles_post_ra>
